<compile_context>
chip_gen: v5e
topology: v5e:2x2
jax: 0.10.0
libtpu: 0.0.40
codegen_flags: <defaults>
</compile_context>

<pallas_src>
import jax
import jax.numpy as jnp
from jax.experimental import pallas as pl
from jax.experimental.pallas import tpu as pltpu


def _round_up(x, m):
    return (x + m - 1) // m * m


def _qfunc_kernel(obs_ref, act_ref, w1o_ref, w1a_ref, b1_ref,
                  w2_ref, b2_ref, w3_ref, b3_ref, o_ref):
    # Layer 1: fused concat -> two MXU matmuls sharing one f32 accumulator.
    h = jnp.dot(obs_ref[...], w1o_ref[...], preferred_element_type=jnp.float32)
    h = h + jnp.dot(act_ref[...], w1a_ref[...], preferred_element_type=jnp.float32)
    h = jnp.maximum(h + b1_ref[...], 0.0)                     # (tile_b, H1p)

    # Layer 2: MXU matmul + bias + ReLU.
    h = jnp.dot(h, w2_ref[...], preferred_element_type=jnp.float32) + b2_ref[...]
    h = jnp.maximum(h, 0.0)                                    # (tile_b, H2p)

    # Head (out_features == 1): keep it off the (already busy) MXU. Transpose
    # once on the XLU, multiply by the head column on the VPU, reduce over
    # sublanes -> a lane-dense (1, tile_b) row that stores without masking.
    ht = h.T                                                    # (H2p, tile_b)
    q = jnp.sum(ht * w3_ref[...], axis=0, keepdims=True) + b3_ref[...]
    o_ref[...] = q.astype(o_ref.dtype)


def pack_params(params, obs_dim):
    """Split w1 into obs/act halves and zero-pad hidden widths to multiples of 128.

    Zero padding is semantically a no-op (zero weights + zero bias + ReLU(0)=0,
    and zero-padded w3 rows contribute nothing to the head sum).
    Weights are stored [in_features, out_features]; biases [1, out_features].
    """
    w1, b1 = params["w1"], params["b1"]
    w2, b2 = params["w2"], params["b2"]
    w3, b3 = params["w3"], params["b3"]
    h1, h2 = w1.shape[1], w2.shape[1]
    h1p, h2p = _round_up(h1, 128), _round_up(h2, 128)

    def pad2(a, rows, cols):
        return jnp.pad(a, ((0, rows - a.shape[0]), (0, cols - a.shape[1])))

    return {
        "w1_obs": pad2(w1[:obs_dim], obs_dim, h1p),
        "w1_act": pad2(w1[obs_dim:], w1.shape[0] - obs_dim, h1p),
        "b1": pad2(b1, 1, h1p),
        "w2": pad2(w2, h1p, h2p),
        "b2": pad2(b2, 1, h2p),
        "w3": pad2(w3, h2p, 1),
        "b3": b3,
    }


@jax.jit
def mlp_q_function(obs, act, packed):
    """Pallas forward of MLPQFunction: obs [B, obs_dim], act [B, act_dim] -> q [B]."""
    B, obs_dim = obs.shape
    act_dim = act.shape[1]
    w1o, w1a = packed["w1_obs"], packed["w1_act"]
    b1, w2, b2 = packed["b1"], packed["w2"], packed["b2"]
    w3, b3 = packed["w3"], packed["b3"]
    H1, H2 = w1o.shape[1], w2.shape[1]

    # Batch tile: >=128 rows (lane-dense output row), up to 512 rows so the
    # activation stream pipelines well while weights stay VMEM-resident.
    tile_b = min(512, _round_up(B, 128))
    B_pad = _round_up(B, tile_b)
    if B_pad != B:  # pad ragged batches; padded rows are sliced off below
        obs = jnp.pad(obs, ((0, B_pad - B), (0, 0)))
        act = jnp.pad(act, ((0, B_pad - B), (0, 0)))
    num_tiles = B_pad // tile_b

    def full(a):
        return pl.BlockSpec(a.shape, lambda i: (0, 0))

    cost = pl.CostEstimate(
        flops=2 * B_pad * (obs_dim * H1 + act_dim * H1 + H1 * H2 + H2),
        transcendentals=0,
        bytes_accessed=4 * (B_pad * (obs_dim + act_dim + 1)
                            + (obs_dim + act_dim) * H1 + H1 * H2
                            + H1 + H2 + H2 + 1),
    )

    out = pl.pallas_call(
        _qfunc_kernel,
        out_shape=jax.ShapeDtypeStruct((1, B_pad), jnp.float32),
        grid=(num_tiles,),
        in_specs=[
            pl.BlockSpec((tile_b, obs_dim), lambda i: (i, 0)),
            pl.BlockSpec((tile_b, act_dim), lambda i: (i, 0)),
            full(w1o), full(w1a), full(b1),
            full(w2), full(b2),
            full(w3), full(b3),
        ],
        out_specs=pl.BlockSpec((1, tile_b), lambda i: (0, i)),
        compiler_params=pltpu.CompilerParams(
            dimension_semantics=("parallel",)),
        cost_estimate=cost,
    )(obs, act, w1o, w1a, b1, w2, b2, w3, b3)

    return out[0, :B]  # lane-dense slab -> [B] (torch.squeeze(q, -1))


def init_params(key, obs_dim, act_dim, hidden_sizes):
    """Deterministic init mimicking nn.Linear default (uniform +/- 1/sqrt(fan_in))."""
    sizes = [obs_dim + act_dim] + list(hidden_sizes) + [1]
    params = {}
    for j in range(len(sizes) - 1):
        fan_in, fan_out = sizes[j], sizes[j + 1]
        key, kw, kb = jax.random.split(key, 3)
        bound = 1.0 / jnp.sqrt(jnp.float32(fan_in))
        params[f"w{j + 1}"] = jax.random.uniform(
            kw, (fan_in, fan_out), jnp.float32, -bound, bound)
        params[f"b{j + 1}"] = jax.random.uniform(
            kb, (1, fan_out), jnp.float32, -bound, bound)
    return params


def _reference(obs, act, params):
    x = jnp.concatenate([obs, act], axis=-1)
    h = jnp.maximum(x @ params["w1"] + params["b1"], 0.0)
    h = jnp.maximum(h @ params["w2"] + params["b2"], 0.0)
    q = h @ params["w3"] + params["b3"]
    return jnp.squeeze(q, axis=-1)


if __name__ == "__main__":
    key = jax.random.PRNGKey(0)
    B, obs_dim, act_dim = 8, 16, 8
    hidden_sizes = (32, 32)

    k_obs, k_act, k_params = jax.random.split(key, 3)
    obs = jax.random.normal(k_obs, (B, obs_dim), jnp.float32)
    act = jax.random.normal(k_act, (B, act_dim), jnp.float32)
    params = init_params(k_params, obs_dim, act_dim, hidden_sizes)
    packed = pack_params(params, obs_dim)

    q = mlp_q_function(obs, act, packed)
    q = jax.block_until_ready(q)

    q_ref = _reference(obs, act, params)
    assert q.shape == (B,), q.shape
    assert jnp.allclose(q, q_ref, atol=1e-5, rtol=1e-5), (q, q_ref)

    print("KERNEL_OK")
</pallas_src>

<mosaic_0001>
module attributes {stable_mosaic.version = 11 : i64} {
  func.func @_qfunc_kernel(%arg0: i32, %arg1: memref<128x16xf32, #tpu.memory_space<vmem>>, %arg2: memref<128x8xf32, #tpu.memory_space<vmem>>, %arg3: memref<16x128xf32, #tpu.memory_space<vmem>>, %arg4: memref<8x128xf32, #tpu.memory_space<vmem>>, %arg5: memref<1x128xf32, #tpu.memory_space<vmem>>, %arg6: memref<128x128xf32, #tpu.memory_space<vmem>>, %arg7: memref<1x128xf32, #tpu.memory_space<vmem>>, %arg8: memref<128x1xf32, #tpu.memory_space<vmem>>, %arg9: memref<1x1xf32, #tpu.memory_space<vmem>>, %arg10: memref<1x128xf32, #tpu.memory_space<vmem>>) attributes {dimension_semantics = [#tpu.dimension_semantics<parallel>], iteration_bounds = array<i64: 1>, scalar_prefetch = 0 : i64, scratch_operands = 0 : i64, tpu.core_type = #tpu.core_type<tc>, window_params = [{transform_indices = @transform_0, window_bounds = array<i64: 128, 16>}, {transform_indices = @transform_1, window_bounds = array<i64: 128, 8>}, {pipeline_mode = #tpu.pipeline_mode<synchronous>, transform_indices = @transform_2, window_bounds = array<i64: 16, 128>}, {pipeline_mode = #tpu.pipeline_mode<synchronous>, transform_indices = @transform_3, window_bounds = array<i64: 8, 128>}, {pipeline_mode = #tpu.pipeline_mode<synchronous>, transform_indices = @transform_4, window_bounds = array<i64: 1, 128>}, {pipeline_mode = #tpu.pipeline_mode<synchronous>, transform_indices = @transform_5, window_bounds = array<i64: 128, 128>}, {pipeline_mode = #tpu.pipeline_mode<synchronous>, transform_indices = @transform_6, window_bounds = array<i64: 1, 128>}, {pipeline_mode = #tpu.pipeline_mode<synchronous>, transform_indices = @transform_7, window_bounds = array<i64: 128, 1>}, {pipeline_mode = #tpu.pipeline_mode<synchronous>, transform_indices = @transform_8, window_bounds = array<i64: 1, 1>}, {transform_indices = @transform_9, window_bounds = array<i64: 1, 128>}]} {
    %c0 = arith.constant 0 : index
    %c0_0 = arith.constant 0 : index
    %0 = vector.load %arg1[%c0, %c0_0] : memref<128x16xf32, #tpu.memory_space<vmem>>, vector<128x16xf32>
    %c0_1 = arith.constant 0 : index
    %c0_2 = arith.constant 0 : index
    %1 = vector.load %arg3[%c0_1, %c0_2] : memref<16x128xf32, #tpu.memory_space<vmem>>, vector<16x128xf32>
    %cst = arith.constant dense<0.000000e+00> : vector<128x128xf32>
    %2 = tpu.matmul %0, %1, %cst {dimension_numbers = #tpu.dot_dimension_numbers<[1], [0], [0], [1], [0, 0, 1, 1], [], []>} : vector<128x16xf32>, vector<16x128xf32>, vector<128x128xf32> -> vector<128x128xf32>
    %c0_3 = arith.constant 0 : index
    %c0_4 = arith.constant 0 : index
    %3 = vector.load %arg2[%c0_3, %c0_4] : memref<128x8xf32, #tpu.memory_space<vmem>>, vector<128x8xf32>
    %c0_5 = arith.constant 0 : index
    %c0_6 = arith.constant 0 : index
    %4 = vector.load %arg4[%c0_5, %c0_6] : memref<8x128xf32, #tpu.memory_space<vmem>>, vector<8x128xf32>
    %cst_7 = arith.constant dense<0.000000e+00> : vector<128x128xf32>
    %5 = tpu.matmul %3, %4, %cst_7 {dimension_numbers = #tpu.dot_dimension_numbers<[1], [0], [0], [1], [0, 0, 1, 1], [], []>} : vector<128x8xf32>, vector<8x128xf32>, vector<128x128xf32> -> vector<128x128xf32>
    %6 = arith.addf %2, %5 : vector<128x128xf32>
    %c0_8 = arith.constant 0 : index
    %c0_9 = arith.constant 0 : index
    %7 = vector.load %arg5[%c0_8, %c0_9] : memref<1x128xf32, #tpu.memory_space<vmem>>, vector<1x128xf32>
    %8 = vector.broadcast %7 : vector<1x128xf32> to vector<128x128xf32>
    %9 = arith.addf %6, %8 : vector<128x128xf32>
    %cst_10 = arith.constant 0.000000e+00 : f32
    %10 = vector.broadcast %cst_10 : f32 to vector<128x128xf32>
    %11 = arith.maximumf %9, %10 : vector<128x128xf32>
    %c0_11 = arith.constant 0 : index
    %c0_12 = arith.constant 0 : index
    %12 = vector.load %arg6[%c0_11, %c0_12] : memref<128x128xf32, #tpu.memory_space<vmem>>, vector<128x128xf32>
    %cst_13 = arith.constant dense<0.000000e+00> : vector<128x128xf32>
    %13 = tpu.matmul %11, %12, %cst_13 {dimension_numbers = #tpu.dot_dimension_numbers<[1], [0], [0], [1], [0, 0, 1, 1], [], []>} : vector<128x128xf32>, vector<128x128xf32>, vector<128x128xf32> -> vector<128x128xf32>
    %c0_14 = arith.constant 0 : index
    %c0_15 = arith.constant 0 : index
    %14 = vector.load %arg7[%c0_14, %c0_15] : memref<1x128xf32, #tpu.memory_space<vmem>>, vector<1x128xf32>
    %15 = vector.broadcast %14 : vector<1x128xf32> to vector<128x128xf32>
    %16 = arith.addf %13, %15 : vector<128x128xf32>
    %cst_16 = arith.constant 0.000000e+00 : f32
    %17 = vector.broadcast %cst_16 : f32 to vector<128x128xf32>
    %18 = arith.maximumf %16, %17 : vector<128x128xf32>
    %19 = tpu.transpose %18, [1, 0] : vector<128x128xf32> -> vector<128x128xf32>
    %c0_17 = arith.constant 0 : index
    %c0_18 = arith.constant 0 : index
    %20 = vector.load %arg8[%c0_17, %c0_18] : memref<128x1xf32, #tpu.memory_space<vmem>>, vector<128x1xf32>
    %21 = vector.broadcast %20 : vector<128x1xf32> to vector<128x128xf32>
    %22 = arith.mulf %19, %21 : vector<128x128xf32>
    %cst_19 = arith.constant dense<0.000000e+00> : vector<128xf32>
    %23 = vector.multi_reduction <add>, %22, %cst_19 [0] : vector<128x128xf32> to vector<128xf32>
    %24 = vector.shape_cast %23 : vector<128xf32> to vector<1x128xf32>
    %c0_20 = arith.constant 0 : index
    %c0_21 = arith.constant 0 : index
    %25 = vector.load %arg9[%c0_20, %c0_21] : memref<1x1xf32, #tpu.memory_space<vmem>>, vector<1x1xf32>
    %26 = vector.broadcast %25 : vector<1x1xf32> to vector<1x128xf32>
    %27 = arith.addf %24, %26 : vector<1x128xf32>
    %c0_22 = arith.constant 0 : index
    %c0_23 = arith.constant 0 : index
    %28 = vector.load %arg10[%c0_22, %c0_23] : memref<1x128xf32, #tpu.memory_space<vmem>>, vector<1x128xf32>
    tpu.vector_store %arg10[%c0_22, %c0_23], %27 {strides = array<i32>} : memref<1x128xf32, #tpu.memory_space<vmem>>, vector<1x128xf32>,
    return
  }
  func.func @transform_0(%arg0: i32) -> (i32, i32) {
    %c0_i32 = arith.constant 0 : i32
    %c0_i32_0 = arith.constant 0 : i32
    return %arg0, %c0_i32 : i32, i32
  }
  func.func @transform_1(%arg0: i32) -> (i32, i32) {
    %c0_i32 = arith.constant 0 : i32
    %c0_i32_0 = arith.constant 0 : i32
    return %arg0, %c0_i32 : i32, i32
  }
  func.func @transform_2(%arg0: i32) -> (i32, i32) {
    %c0_i32 = arith.constant 0 : i32
    %c0_i32_0 = arith.constant 0 : i32
    %c0_i32_1 = arith.constant 0 : i32
    return %c0_i32, %c0_i32_0 : i32, i32
  }
  func.func @transform_3(%arg0: i32) -> (i32, i32) {
    %c0_i32 = arith.constant 0 : i32
    %c0_i32_0 = arith.constant 0 : i32
    %c0_i32_1 = arith.constant 0 : i32
    return %c0_i32, %c0_i32_0 : i32, i32
  }
  func.func @transform_4(%arg0: i32) -> (i32, i32) {
    %c0_i32 = arith.constant 0 : i32
    %c0_i32_0 = arith.constant 0 : i32
    %c0_i32_1 = arith.constant 0 : i32
    return %c0_i32, %c0_i32_0 : i32, i32
  }
  func.func @transform_5(%arg0: i32) -> (i32, i32) {
    %c0_i32 = arith.constant 0 : i32
    %c0_i32_0 = arith.constant 0 : i32
    %c0_i32_1 = arith.constant 0 : i32
    return %c0_i32, %c0_i32_0 : i32, i32
  }
  func.func @transform_6(%arg0: i32) -> (i32, i32) {
    %c0_i32 = arith.constant 0 : i32
    %c0_i32_0 = arith.constant 0 : i32
    %c0_i32_1 = arith.constant 0 : i32
    return %c0_i32, %c0_i32_0 : i32, i32
  }
  func.func @transform_7(%arg0: i32) -> (i32, i32) {
    %c0_i32 = arith.constant 0 : i32
    %c0_i32_0 = arith.constant 0 : i32
    %c0_i32_1 = arith.constant 0 : i32
    return %c0_i32, %c0_i32_0 : i32, i32
  }
  func.func @transform_8(%arg0: i32) -> (i32, i32) {
    %c0_i32 = arith.constant 0 : i32
    %c0_i32_0 = arith.constant 0 : i32
    %c0_i32_1 = arith.constant 0 : i32
    return %c0_i32, %c0_i32_0 : i32, i32
  }
  func.func @transform_9(%arg0: i32) -> (i32, i32) {
    %c0_i32 = arith.constant 0 : i32
    %c0_i32_0 = arith.constant 0 : i32
    return %c0_i32, %arg0 : i32, i32
  }
}

</mosaic_0001>

<bundles_post_ra>
// kernel: mlp_q_function.1
= control target key start
LH: loop header
LB: loop body
LE: loop exit
PB: predicated region body
PF: predicated region fallthrough
CT: control target
= control target key end

     0   :  { %vm69_vm0 = vcmask 64512   ;;  %vm183_vm1 = vcmask 130048   ;;  %s1001_s2 = inlined_call_operand.vmem [shape: f32[16,128], index: 2, kind: input, shape index: {}]   ;;  %s1002_s3 = inlined_call_operand.vmem [shape: f32[8,128], index: 3, kind: input, shape index: {}]   ;;  %s1003_s1 = inlined_call_operand.vmem [shape: f32[128,8], index: 1, kind: input, shape index: {}]   ;;  %s1004_s0 = inlined_call_operand.vmem [shape: f32[128,16], index: 0, kind: input, shape index: {}]   ;;  %s1005_s4 = inlined_call_operand.vmem [shape: f32[1,128], index: 4, kind: input, shape index: {}]   ;;  %s1006_s5 = inlined_call_operand.vmem [shape: f32[128,128], index: 5, kind: input, shape index: {}]   ;;  %s1007_s6 = inlined_call_operand.vmem [shape: f32[1,128], index: 6, kind: input, shape index: {}]   ;;  %s1008_s7 = inlined_call_operand.vmem [shape: f32[128,1], index: 7, kind: input, shape index: {}]   ;;  %s1009_s8 = inlined_call_operand.<no memory space> [shape: f32[1,1], index: 8, kind: input, shape index: {}]   ;;  %s1010_s9 = inlined_call_operand.vmem [shape: f32[1,128], index: 9, kind: output, shape index: {}]  }
   0x1   :  { %v51_v0 = vld [vmem:[%s1001_s2 + $0x8] sm:$0xff]  ;;  %v68_v1 = vld [vmem:[%s1002_s3] sm:$0xff]  ;;  %v54_v7 = vld [vmem:[%s1003_s1 + $0x10] sm:$0xff] }
   0x2   :  { %v50_v2 = vld [vmem:[%s1001_s2] sm:$0xff]  ;;  %246 = vmatpush.msra.mxu1 %v51_v0  ;;  %133 = vmatpush.msra.mxu0 %v68_v1  ;;  %v53_v5 = vld [vmem:[%s1003_s1 + $0x8] sm:$0xff]  ;;  %v36_v8 = vld [vmem:[%s1004_s0 + $0x10] sm:$0xff] }
   0x3   :  { %v52_v3 = vld [vmem:[%s1003_s1] sm:$0xff]  ;;  %v35_v6 = vld [vmem:[%s1004_s0 + $0x8] sm:$0xff]  ;;  %v55_v9 = vld [vmem:[%s1003_s1 + $0x18] sm:$0xff] }
   0x4   :  { %v34_v4 = vld [vmem:[%s1004_s0] sm:$0xff]  ;;  %612 = vmatmul.msk.f32.vlgmr.msra.gmra.mxu0 %vm69_vm0, %v52_v3  ;;  %247 = vmatpush.msra.mxu1 %v50_v2  ;;  %v37_v10 = vld [vmem:[%s1004_s0 + $0x18] sm:$0xff]  ;;  %v57_v13 = vld [vmem:[%s1003_s1 + $0x28] sm:$0xff] }
   0x5   :  { %628 = vmatmul.msk.f32.vlgmr.msra.gmra.mxu1 %vm183_vm1, %v34_v4  ;;  %v56_v11 = vld [vmem:[%s1003_s1 + $0x20] sm:$0xff]  ;;  %v39_v14 = vld [vmem:[%s1004_s0 + $0x28] sm:$0xff]  ;;  %v58_v15 = vld [vmem:[%s1003_s1 + $0x30] sm:$0xff] }
   0x6   :  { %v38_v12 = vld [vmem:[%s1004_s0 + $0x20] sm:$0xff]  ;;  %v40_v16 = vld [vmem:[%s1004_s0 + $0x30] sm:$0xff]  ;;  %v59_v17 = vld [vmem:[%s1003_s1 + $0x38] sm:$0xff] }
   0x7   :  { %v41_v18 = vld [vmem:[%s1004_s0 + $0x38] sm:$0xff]  ;;  %v60_v19 = vld [vmem:[%s1003_s1 + $0x40] sm:$0xff]  ;;  %v347_v22 = vld [vmem:[%s1006_s5 + $0x70] sm:$0xff] }
   0x8   :  { %v42_v20 = vld [vmem:[%s1004_s0 + $0x40] sm:$0xff]  ;;  %v348_v21 = vld [vmem:[%s1006_s5 + $0x78] sm:$0xff]  ;;  %v61_v23 = vld [vmem:[%s1003_s1 + $0x48] sm:$0xff] }
   0x9   :  { %353 = vmatpush.msra.mxu2 %v348_v21  ;;  %644 = vmatpush.msra.mxu3 %v348_v21  ;;  %v43_v24 = vld [vmem:[%s1004_s0 + $0x48] sm:$0xff]  ;;  %v345_v26 = vld [vmem:[%s1006_s5 + $0x60] sm:$0xff]  ;;  %v344_v27 = vld [vmem:[%s1006_s5 + $0x58] sm:$0xff] }
   0xa   :  { %v346_v25 = vld [vmem:[%s1006_s5 + $0x68] sm:$0xff]  ;;  %v62_v28 = vld [vmem:[%s1003_s1 + $0x50] sm:$0xff]  ;;  %v341_v32 = vld [vmem:[%s1006_s5 + $0x40] sm:$0xff] }
   0xb   :  { %354 = vmatpush.msra.mxu2 %v347_v22  ;;  %645 = vmatpush.msra.mxu3 %v347_v22  ;;  %v343_v29 = vld [vmem:[%s1006_s5 + $0x50] sm:$0xff]  ;;  %v342_v31 = vld [vmem:[%s1006_s5 + $0x48] sm:$0xff]  ;;  %v340_v33 = vld [vmem:[%s1006_s5 + $0x38] sm:$0xff] }
   0xc   :  { %613 = vmatmul.msk.f32.gmra.mxu0 %vm69_vm0, %v53_v5  ;;  %v44_v30 = vld [vmem:[%s1004_s0 + $0x50] sm:$0xff]  ;;  %v63_v34 = vld [vmem:[%s1003_s1 + $0x58] sm:$0xff]  ;;  %v338_v37 = vld [vmem:[%s1006_s5 + $0x28] sm:$0xff] }
   0xd   :  { %629 = vmatmul.msk.f32.gmra.mxu1 %vm183_vm1, %v35_v6  ;;  %355 = vmatpush.msra.mxu2 %v346_v25  ;;  %v339_v35 = vld [vmem:[%s1006_s5 + $0x30] sm:$0xff]  ;;  %v45_v36 = vld [vmem:[%s1004_s0 + $0x58] sm:$0xff]  ;;  %v337_v38 = vld [vmem:[%s1006_s5 + $0x20] sm:$0xff] }
   0xe   :  { %646 = vmatpush.msra.mxu3 %v346_v25  ;;  %v64_v39 = vld [vmem:[%s1003_s1 + $0x60] sm:$0xff]  ;;  %v336_v40 = vld [vmem:[%s1006_s5 + $0x18] sm:$0xff]  ;;  %v335_v42 = vld [vmem:[%s1006_s5 + $0x10] sm:$0xff] }
   0xf   :  { %356 = vmatpush.msra.mxu2 %v345_v26  ;;  %v46_v41 = vld [vmem:[%s1004_s0 + $0x60] sm:$0xff]  ;;  %v334_v43 = vld [vmem:[%s1006_s5 + $0x8] sm:$0xff]  ;;  %v66_v47 = vld [vmem:[%s1003_s1 + $0x70] sm:$0xff] }
  0x10   :  { %647 = vmatpush.msra.mxu3 %v345_v26  ;;  %v333_v44 = vld [vmem:[%s1006_s5] sm:$0xff]  ;;  %v65_v45 = vld [vmem:[%s1003_s1 + $0x68] sm:$0xff]  ;;  %v48_v48 = vld [vmem:[%s1004_s0 + $0x70] sm:$0xff] }
  0x11   :  { %357 = vmatpush.msra.mxu2 %v344_v27  ;;  %v47_v46 = vld [vmem:[%s1004_s0 + $0x68] sm:$0xff]  ;;  %v67_v49 = vld [vmem:[%s1003_s1 + $0x78] sm:$0xff]  ;;  %v905_v52 = vld [vmem:[%s1005_s4] ss:$0 sm:$0xff] }
  0x12   :  { %648 = vmatpush.msra.mxu3 %v344_v27  ;;  %v49_v50 = vld [vmem:[%s1004_s0 + $0x78] sm:$0xff] }
  0x13   :  { %358 = vmatpush.msra.mxu2 %v343_v29 }
  0x14   :  { %614 = vmatmul.msk.f32.gmra.mxu0 %vm69_vm0, %v54_v7  ;;  %649 = vmatpush.msra.mxu3 %v343_v29 }
  0x15   :  { %630 = vmatmul.msk.f32.gmra.mxu1 %vm183_vm1, %v36_v8  ;;  %359 = vmatpush.msra.mxu2 %v342_v31 }
  0x16   :  { %650 = vmatpush.msra.mxu3 %v342_v31 }
  0x17   :  { %360 = vmatpush.msra.mxu2 %v341_v32 }
  0x18   :  { %651 = vmatpush.msra.mxu3 %v341_v32 }
  0x19   :  { %361 = vmatpush.msra.mxu2 %v340_v33 }
  0x1a   :  { %652 = vmatpush.msra.mxu3 %v340_v33 }
  0x1b   :  { %362 = vmatpush.msra.mxu2 %v339_v35 }
  0x1c   :  { %615 = vmatmul.msk.f32.gmra.mxu0 %vm69_vm0, %v55_v9  ;;  %653 = vmatpush.msra.mxu3 %v339_v35 }
  0x1d   :  { %631 = vmatmul.msk.f32.gmra.mxu1 %vm183_vm1, %v37_v10  ;;  %363 = vmatpush.msra.mxu2 %v338_v37 }
  0x1e   :  { %654 = vmatpush.msra.mxu3 %v338_v37 }
  0x1f   :  { %364 = vmatpush.msra.mxu2 %v337_v38 }
  0x20   :  { %655 = vmatpush.msra.mxu3 %v337_v38 }
  0x21   :  { %365 = vmatpush.msra.mxu2 %v336_v40 }
  0x22   :  { %656 = vmatpush.msra.mxu3 %v336_v40 }
  0x23   :  { %366 = vmatpush.msra.mxu2 %v335_v42 }
  0x24   :  { %616 = vmatmul.msk.f32.gmra.mxu0 %vm69_vm0, %v56_v11  ;;  %657 = vmatpush.msra.mxu3 %v335_v42 }
  0x25   :  { %632 = vmatmul.msk.f32.gmra.mxu1 %vm183_vm1, %v38_v12  ;;  %367 = vmatpush.msra.mxu2 %v334_v43 }
  0x26   :  { %658 = vmatpush.msra.mxu3 %v334_v43 }
  0x27   :  { %368 = vmatpush.msra.mxu2 %v333_v44 }
  0x28   :  { %659 = vmatpush.msra.mxu3 %v333_v44 }
  0x2c   :  { %617 = vmatmul.msk.f32.gmra.mxu0 %vm69_vm0, %v57_v13 }
  0x2d   :  { %633 = vmatmul.msk.f32.gmra.mxu1 %vm183_vm1, %v39_v14 }
  0x34   :  { %618 = vmatmul.msk.f32.gmra.mxu0 %vm69_vm0, %v58_v15 }
  0x35   :  { %634 = vmatmul.msk.f32.gmra.mxu1 %vm183_vm1, %v40_v16 }
  0x3c   :  { %619 = vmatmul.msk.f32.gmra.mxu0 %vm69_vm0, %v59_v17 }
  0x3d   :  { %635 = vmatmul.msk.f32.gmra.mxu1 %vm183_vm1, %v41_v18 }
  0x44   :  { %620 = vmatmul.msk.f32.gmra.mxu0 %vm69_vm0, %v60_v19 }
  0x45   :  { %636 = vmatmul.msk.f32.gmra.mxu1 %vm183_vm1, %v42_v20 }
  0x4c   :  { %621 = vmatmul.msk.f32.gmra.mxu0 %vm69_vm0, %v61_v23 }
  0x4d   :  { %637 = vmatmul.msk.f32.gmra.mxu1 %vm183_vm1, %v43_v24 }
  0x54   :  { %622 = vmatmul.msk.f32.gmra.mxu0 %vm69_vm0, %v62_v28 }
  0x55   :  { %638 = vmatmul.msk.f32.gmra.mxu1 %vm183_vm1, %v44_v30 }
  0x5c   :  { %623 = vmatmul.msk.f32.gmra.mxu0 %vm69_vm0, %v63_v34 }
  0x5d   :  { %639 = vmatmul.msk.f32.gmra.mxu1 %vm183_vm1, %v45_v36 }
  0x64   :  { %624 = vmatmul.msk.f32.gmra.mxu0 %vm69_vm0, %v64_v39 }
  0x65   :  { %640 = vmatmul.msk.f32.gmra.mxu1 %vm183_vm1, %v46_v41 }
  0x6c   :  { %625 = vmatmul.msk.f32.gmra.mxu0 %vm69_vm0, %v65_v45 }
  0x6d   :  { %641 = vmatmul.msk.f32.gmra.mxu1 %vm183_vm1, %v47_v46 }
  0x74   :  { %626 = vmatmul.msk.f32.gmra.mxu0 %vm69_vm0, %v66_v47 }
  0x75   :  { %642 = vmatmul.msk.f32.gmra.mxu1 %vm183_vm1, %v48_v48 }
  0x7c   :  { %627 = vmatmul.msk.f32.gmra.mxu0 %vm69_vm0, %v67_v49 }
  0x7d   :  { %643 = vmatmul.msk.f32.gmra.mxu1 %vm183_vm1, %v49_v50 }
  0x81   :  { %v135_v51 = vpop.f32.mrf.mxu0 }
  0x82   :  { %v249_v53 = vpop.f32.mrf.mxu1 }
  0x83   :  { %v250_v54 = vadd.f32 %v249_v53, %v135_v51 }
  0x85   :  { %v301_v55 = vadd.f32 %v905_v52, %v250_v54 }
  0x87   :  { %v317_v56 = vmax.f32 %v301_v55, 0.0 }
  0x89   :  { %v138_v57 = vpop.f32.mrf.mxu0  ;;  %369 = vmatmul.f32.vlgmr.msra.gmra.mxu2 %v317_v56 }
  0x8a   :  { %v252_v58 = vpop.f32.mrf.mxu1 }
  0x8b   :  { %v253_v59 = vadd.f32 %v252_v58, %v138_v57 }
  0x8d   :  { %v302_v60 = vadd.f32 %v905_v52, %v253_v59 }
  0x8f   :  { %v318_v61 = vmax.f32 %v302_v60, 0.0 }
  0x91   :  { %v141_v62 = vpop.f32.mrf.mxu0  ;;  %372 = vmatmul.f32.gmra.mxu2 %v318_v61 }
  0x92   :  { %v255_v63 = vpop.f32.mrf.mxu1 }
  0x93   :  { %v256_v0 = vadd.f32 %v255_v63, %v141_v62 }
  0x95   :  { %v303_v1 = vadd.f32 %v905_v52, %v256_v0 }
  0x97   :  { %v319_v2 = vmax.f32 %v303_v1, 0.0 }
  0x99   :  { %v144_v3 = vpop.f32.mrf.mxu0  ;;  %375 = vmatmul.f32.gmra.mxu2 %v319_v2 }
  0x9a   :  { %v258_v4 = vpop.f32.mrf.mxu1 }
  0x9b   :  { %v259_v5 = vadd.f32 %v258_v4, %v144_v3 }
  0x9d   :  { %v304_v6 = vadd.f32 %v905_v52, %v259_v5  ;;  %v926_v5 = vld [vmem:[%s1007_s6] ss:$0 sm:$0xff] }
  0x9f   :  { %v320_v7 = vmax.f32 %v304_v6, 0.0 }
  0xa1   :  { %v147_v8 = vpop.f32.mrf.mxu0  ;;  %378 = vmatmul.f32.gmra.mxu2 %v320_v7 }
  0xa2   :  { %v261_v9 = vpop.f32.mrf.mxu1 }
  0xa3   :  { %v262_v10 = vadd.f32 %v261_v9, %v147_v8 }
  0xa5   :  { %v305_v11 = vadd.f32 %v905_v52, %v262_v10 }
  0xa7   :  { %v321_v12 = vmax.f32 %v305_v11, 0.0 }
  0xa9   :  { %v150_v13 = vpop.f32.mrf.mxu0  ;;  %381 = vmatmul.f32.gmra.mxu2 %v321_v12 }
  0xaa   :  { %v264_v14 = vpop.f32.mrf.mxu1 }
  0xab   :  { %v265_v15 = vadd.f32 %v264_v14, %v150_v13  ;;  %v466_v14 = vld [vmem:[%s1008_s7] sm:$0xff] }
  0xad   :  { %v306_v16 = vadd.f32 %v905_v52, %v265_v15  ;;  %v666_v15 = vmov 0  }
  0xae   :  { %661 = vset.pattern.permute.xlu1 %v666_v15  ;;  %662 = vset.pattern.permute.xlu2 %v666_v15 }
  0xaf   :  { %v322_v17 = vmax.f32 %v306_v16, 0.0  ;;  %484 = vperm.xlu1 %661, %v466_v14  }
  0xb1   :  { %v153_v18 = vpop.f32.mrf.mxu0  ;;  %384 = vmatmul.f32.gmra.mxu2 %v322_v17 }
  0xb2   :  { %v267_v19 = vpop.f32.mrf.mxu1 }
  0xb3   :  { %v268_v20 = vadd.f32 %v267_v19, %v153_v18  ;;  %v467_v19 = vld [vmem:[%s1008_s7 + $0x8] sm:$0xff] }
  0xb5   :  { %v307_v21 = vadd.f32 %v905_v52, %v268_v20 }
  0xb7   :  { %v323_v22 = vmax.f32 %v307_v21, 0.0  ;;  %489 = vperm.xlu1 %661, %v467_v19  }
  0xb9   :  { %v156_v23 = vpop.f32.mrf.mxu0  ;;  %387 = vmatmul.f32.gmra.mxu2 %v323_v22 }
  0xba   :  { %v270_v24 = vpop.f32.mrf.mxu1 }
  0xbb   :  { %v271_v25 = vadd.f32 %v270_v24, %v156_v23  ;;  %v470_v23 = vld [vmem:[%s1008_s7 + $0x20] sm:$0xff] }
  0xbd   :  { %v308_v26 = vadd.f32 %v905_v52, %v271_v25 }
  0xbf   :  { %v324_v27 = vmax.f32 %v308_v26, 0.0  ;;  %504 = vperm.xlu1 %661, %v470_v23  }
  0xc1   :  { %v159_v28 = vpop.f32.mrf.mxu0  ;;  %390 = vmatmul.f32.gmra.mxu2 %v324_v27  ;;  %v472_v27 = vld [vmem:[%s1008_s7 + $0x30] sm:$0xff] }
  0xc2   :  { %v273_v29 = vpop.f32.mrf.mxu1 }
  0xc3   :  { %v274_v30 = vadd.f32 %v273_v29, %v159_v28 }
  0xc5   :  { %v309_v31 = vadd.f32 %v905_v52, %v274_v30 }
  0xc7   :  { %v325_v32 = vmax.f32 %v309_v31, 0.0  ;;  %514 = vperm.xlu1 %661, %v472_v27   ;;  %v474_v31 = vld [vmem:[%s1008_s7 + $0x40] sm:$0xff] }
  0xc9   :  { %v162_v33 = vpop.f32.mrf.mxu0  ;;  %393 = vmatmul.f32.gmra.mxu2 %v325_v32  ;;  %v468_v32 = vld [vmem:[%s1008_s7 + $0x10] sm:$0xff] }
  0xca   :  { %v276_v34 = vpop.f32.mrf.mxu1  ;;  %494 = vperm.xlu2 %662, %v468_v32  }
  0xcb   :  { %v277_v35 = vadd.f32 %v276_v34, %v162_v33 }
  0xcd   :  { %v310_v36 = vadd.f32 %v905_v52, %v277_v35 }
  0xcf   :  { %v326_v37 = vmax.f32 %v310_v36, 0.0  ;;  %524 = vperm.xlu1 %661, %v474_v31   ;;  %v476_v36 = vld [vmem:[%s1008_s7 + $0x50] sm:$0xff] }
  0xd1   :  { %v165_v38 = vpop.f32.mrf.mxu0  ;;  %396 = vmatmul.f32.gmra.mxu2 %v326_v37  ;;  %v469_v37 = vld [vmem:[%s1008_s7 + $0x18] sm:$0xff] }
  0xd2   :  { %v279_v39 = vpop.f32.mrf.mxu1  ;;  %499 = vperm.xlu2 %662, %v469_v37  }
  0xd3   :  { %v280_v40 = vadd.f32 %v279_v39, %v165_v38 }
  0xd5   :  { %v311_v41 = vadd.f32 %v905_v52, %v280_v40 }
  0xd7   :  { %v327_v42 = vmax.f32 %v311_v41, 0.0  ;;  %534 = vperm.xlu1 %661, %v476_v36   ;;  %v478_v41 = vld [vmem:[%s1008_s7 + $0x60] sm:$0xff] }
  0xd9   :  { %v168_v43 = vpop.f32.mrf.mxu0  ;;  %399 = vmatmul.f32.gmra.mxu2 %v327_v42  ;;  %v471_v42 = vld [vmem:[%s1008_s7 + $0x28] sm:$0xff] }
  0xda   :  { %v282_v44 = vpop.f32.mrf.mxu1  ;;  %509 = vperm.xlu2 %662, %v471_v42  }
  0xdb   :  { %v283_v45 = vadd.f32 %v282_v44, %v168_v43 }
  0xdd   :  { %v312_v46 = vadd.f32 %v905_v52, %v283_v45 }
  0xdf   :  { %v328_v47 = vmax.f32 %v312_v46, 0.0  ;;  %544 = vperm.xlu1 %661, %v478_v41   ;;  %v480_v46 = vld [vmem:[%s1008_s7 + $0x70] sm:$0xff] }
  0xe1   :  { %v171_v48 = vpop.f32.mrf.mxu0  ;;  %402 = vmatmul.f32.vlgmr.msra.gmra.mxu3 %v328_v47  ;;  %v14_v47 = vstv %s1009_s8 }
  0xe2   :  { %v285_v49 = vpop.f32.mrf.mxu1  ;;  %15 = vst [vmem:[#allocation2] sm:$0x1] %v14_v47 }
  0xe3   :  { %v286_v50 = vadd.f32 %v285_v49, %v171_v48  ;;  %v473_v48 = vld [vmem:[%s1008_s7 + $0x38] sm:$0xff] }
  0xe4   :  { %519 = vperm.xlu2 %662, %v473_v48  }
  0xe5   :  { %v313_v51 = vadd.f32 %v905_v52, %v286_v50 }
  0xe7   :  { %v329_v53 = vmax.f32 %v313_v51, 0.0  ;;  %554 = vperm.xlu1 %661, %v480_v46  }
  0xe9   :  { %v174_v54 = vpop.f32.mrf.mxu0  ;;  %405 = vmatmul.f32.gmra.mxu3 %v329_v53  ;;  %v599_v53 = vld [vmem:[#allocation2] sm:$0x1] }
  0xea   :  { %v288_v55 = vpop.f32.mrf.mxu1 }
  0xeb   :  { %v289_v56 = vadd.f32 %v288_v55, %v174_v54  ;;  %v475_v54 = vld [vmem:[%s1008_s7 + $0x48] sm:$0xff] }
  0xec   :  { %529 = vperm.xlu2 %662, %v475_v54  }
  0xed   :  { %v314_v57 = vadd.f32 %v905_v52, %v289_v56 }
  0xef   :  { %v330_v58 = vmax.f32 %v314_v57, 0.0  ;;  %602 = vperm.xlu1 %661, %v599_v53  }
  0xf1   :  { %v177_v59 = vpop.f32.mrf.mxu0  ;;  %408 = vmatmul.f32.gmra.mxu3 %v330_v58  ;;  %v477_v58 = vld [vmem:[%s1008_s7 + $0x58] sm:$0xff] }
  0xf2   :  { %v291_v60 = vpop.f32.mrf.mxu1 }
  0xf3   :  { %v292_v61 = vadd.f32 %v291_v60, %v177_v59 }
  0xf4   :  { %539 = vperm.xlu2 %662, %v477_v58  }
  0xf5   :  { %v315_v62 = vadd.f32 %v905_v52, %v292_v61 }
  0xf7   :  { %v331_v63 = vmax.f32 %v315_v62, 0.0  ;;  %v479_v62 = vld [vmem:[%s1008_s7 + $0x68] sm:$0xff] }
  0xf9   :  { %v180_v0 = vpop.f32.mrf.mxu0  ;;  %411 = vmatmul.f32.gmra.mxu3 %v331_v63 }
  0xfa   :  { %v294_v1 = vpop.f32.mrf.mxu1 }
  0xfb   :  { %v295_v2 = vadd.f32 %v294_v1, %v180_v0 }
  0xfc   :  { %549 = vperm.xlu2 %662, %v479_v62  }
  0xfd   :  { %v316_v3 = vadd.f32 %v905_v52, %v295_v2  ;;  %v481_v2 = vld [vmem:[%s1008_s7 + $0x78] sm:$0xff] }
  0xff   :  { %v332_v4 = vmax.f32 %v316_v3, 0.0 }
 0x101   :  { %414 = vmatmul.f32.gmra.mxu3 %v332_v4 }
 0x104   :  { %559 = vperm.xlu2 %662, %v481_v2  }
 0x10c   :  { %v370_v6 = vpop.f32.mrf.mxu2 }
 0x10d   :  { %v371_v7 = vadd.f32 %v926_v5, %v370_v6 }
 0x10f   :  { %v418_v8 = vmax.f32 %v371_v7, 0.0 }
 0x111   :  { %434 = vxpose.xlu0.b32.start [1/16] %v418_v8, 128 }
 0x114   :  { %v373_v9 = vpop.f32.mrf.mxu2 }
 0x115   :  { %v374_v10 = vadd.f32 %v926_v5, %v373_v9 }
 0x117   :  { %v419_v11 = vmax.f32 %v374_v10, 0.0 }
 0x119   :  { %435 = vxpose.xlu0.b32.cont [2/16] %v419_v11, 128 }
 0x11c   :  { %v376_v12 = vpop.f32.mrf.mxu2 }
 0x11d   :  { %v377_v52 = vadd.f32 %v926_v5, %v376_v12 }
 0x11f   :  { %v420_v13 = vmax.f32 %v377_v52, 0.0 }
 0x121   :  { %436 = vxpose.xlu0.b32.cont [3/16] %v420_v13, 128  ;;  %v485_v10 = vpop.permute.xlu1 %484 }
 0x124   :  { %v379_v16 = vpop.f32.mrf.mxu2 }
 0x125   :  { %v380_v17 = vadd.f32 %v926_v5, %v379_v16 }
 0x127   :  { %v421_v18 = vmax.f32 %v380_v17, 0.0  ;;  %v495_v17 = vpop.permute.xlu2 %494 }
 0x129   :  { %437 = vxpose.xlu0.b32.cont [4/16] %v421_v18, 128  ;;  %v490_v12 = vpop.permute.xlu1 %489 }
 0x12c   :  { %v382_v20 = vpop.f32.mrf.mxu2 }
 0x12d   :  { %v383_v21 = vadd.f32 %v926_v5, %v382_v20 }
 0x12f   :  { %v422_v22 = vmax.f32 %v383_v21, 0.0  ;;  %v500_v21 = vpop.permute.xlu2 %499 }
 0x131   :  { %438 = vxpose.xlu0.b32.cont [5/16] %v422_v22, 128 }
 0x134   :  { %v385_v24 = vpop.f32.mrf.mxu2 }
 0x135   :  { %v386_v25 = vadd.f32 %v926_v5, %v385_v24 }
 0x137   :  { %v423_v26 = vmax.f32 %v386_v25, 0.0  ;;  %v505_v25 = vpop.permute.xlu1 %504  ;;  %v510_v32 = vpop.permute.xlu2 %509 }
 0x139   :  { %439 = vxpose.xlu0.b32.cont [6/16] %v423_v26, 128 }
 0x13c   :  { %v388_v28 = vpop.f32.mrf.mxu2 }
 0x13d   :  { %v389_v29 = vadd.f32 %v926_v5, %v388_v28 }
 0x13f   :  { %v424_v30 = vmax.f32 %v389_v29, 0.0 }
 0x141   :  { %440 = vxpose.xlu0.b32.cont [7/16] %v424_v30, 128 }
 0x144   :  { %v391_v33 = vpop.f32.mrf.mxu2 }
 0x145   :  { %v392_v34 = vadd.f32 %v926_v5, %v391_v33 }
 0x147   :  { %v425_v35 = vmax.f32 %v392_v34, 0.0  ;;  %v515_v34 = vpop.permute.xlu1 %514 }
 0x149   :  { %441 = vxpose.xlu0.b32.cont [8/16] %v425_v35, 128  ;;  %v520_v35 = vpop.permute.xlu2 %519 }
 0x14c   :  { %v394_v38 = vpop.f32.mrf.mxu2 }
 0x14d   :  { %v395_v39 = vadd.f32 %v926_v5, %v394_v38 }
 0x14f   :  { %v426_v40 = vmax.f32 %v395_v39, 0.0  ;;  %v525_v37 = vpop.permute.xlu1 %524 }
 0x151   :  { %442 = vxpose.xlu0.b32.cont [9/16] %v426_v40, 128  ;;  %v530_v39 = vpop.permute.xlu2 %529 }
 0x154   :  { %v397_v43 = vpop.f32.mrf.mxu2 }
 0x155   :  { %v398_v44 = vadd.f32 %v926_v5, %v397_v43 }
 0x157   :  { %v427_v45 = vmax.f32 %v398_v44, 0.0  ;;  %v535_v40 = vpop.permute.xlu1 %534 }
 0x159   :  { %443 = vxpose.xlu0.b32.cont [10/16] %v427_v45, 128  ;;  %v540_v43 = vpop.permute.xlu2 %539 }
 0x15c   :  { %v400_v49 = vpop.f32.mrf.mxu2 }
 0x15d   :  { %v401_v50 = vadd.f32 %v926_v5, %v400_v49 }
 0x15f   :  { %v428_v51 = vmax.f32 %v401_v50, 0.0 }
 0x161   :  { %444 = vxpose.xlu0.b32.cont [11/16] %v428_v51, 128 }
 0x164   :  { %v403_v55 = vpop.f32.mrf.mxu3 }
 0x165   :  { %v404_v56 = vadd.f32 %v926_v5, %v403_v55  ;;  %v550_v55 = vpop.permute.xlu2 %549 }
 0x167   :  { %v429_v57 = vmax.f32 %v404_v56, 0.0 }
 0x169   :  { %445 = vxpose.xlu0.b32.cont [12/16] %v429_v57, 128 }
 0x16c   :  { %v406_v59 = vpop.f32.mrf.mxu3 }
 0x16d   :  { %v407_v60 = vadd.f32 %v926_v5, %v406_v59 }
 0x16f   :  { %v430_v61 = vmax.f32 %v407_v60, 0.0 }
 0x171   :  { %446 = vxpose.xlu0.b32.cont [13/16] %v430_v61, 128 }
 0x174   :  { %v409_v63 = vpop.f32.mrf.mxu3 }
 0x175   :  { %v410_v0 = vadd.f32 %v926_v5, %v409_v63 }
 0x177   :  { %v431_v1 = vmax.f32 %v410_v0, 0.0 }
 0x179   :  { %447 = vxpose.xlu0.b32.cont [14/16] %v431_v1, 128 }
 0x17c   :  { %v412_v3 = vpop.f32.mrf.mxu3 }
 0x17d   :  { %v413_v4 = vadd.f32 %v926_v5, %v412_v3  ;;  %v560_v3 = vpop.permute.xlu2 %559 }
 0x17f   :  { %v432_v6 = vmax.f32 %v413_v4, 0.0 }
 0x181   :  { %448 = vxpose.xlu0.b32.cont [15/16] %v432_v6, 128 }
 0x184   :  { %v415_v7 = vpop.f32.mrf.mxu3 }
 0x185   :  { %v416_v8 = vadd.f32 %v926_v5, %v415_v7 }
 0x187   :  { %v433_v9 = vmax.f32 %v416_v8, 0.0 }
 0x189   :  { %449 = vxpose.xlu0.b32.end [16/16] %v433_v9, 128 }
 0x1b5   :  { %v450_v11 = vpop.trf.xlu0 }
 0x1b6   :  { %v562_v13 = vmul.f32 %v485_v10, %v450_v11 }
 0x1bd   :  { %v451_v52 = vpop.trf.xlu0 }
 0x1be   :  { %v563_v14 = vmul.f32 %v490_v12, %v451_v52 }
 0x1c0   :  { %v578_v16 = vadd.f32 %v563_v14, %v562_v13 }
 0x1c5   :  { %v452_v18 = vpop.trf.xlu0 }
 0x1c6   :  { %v564_v19 = vmul.f32 %v495_v17, %v452_v18 }
 0x1c8   :  { %v579_v20 = vadd.f32 %v578_v16, %v564_v19 }
 0x1cd   :  { %v453_v22 = vpop.trf.xlu0 }
 0x1ce   :  { %v565_v23 = vmul.f32 %v500_v21, %v453_v22 }
 0x1d0   :  { %v580_v24 = vadd.f32 %v579_v20, %v565_v23 }
 0x1d5   :  { %v454_v26 = vpop.trf.xlu0 }
 0x1d6   :  { %v566_v5 = vmul.f32 %v505_v25, %v454_v26 }
 0x1d8   :  { %v581_v27 = vadd.f32 %v580_v24, %v566_v5 }
 0x1dd   :  { %v455_v28 = vpop.trf.xlu0 }
 0x1de   :  { %v567_v42 = vmul.f32 %v510_v32, %v455_v28 }
 0x1e0   :  { %v582_v45 = vadd.f32 %v581_v27, %v567_v42 }
 0x1e5   :  { %v456_v29 = vpop.trf.xlu0 }
 0x1e6   :  { %v568_v44 = vmul.f32 %v515_v34, %v456_v29 }
 0x1e8   :  { %v583_v48 = vadd.f32 %v582_v45, %v568_v44 }
 0x1ed   :  { %v457_v30 = vpop.trf.xlu0 }
 0x1ee   :  { %v569_v46 = vmul.f32 %v520_v35, %v457_v30 }
 0x1f0   :  { %663 = vset.pattern.permute.xlu0 %v666_v15  ;;  %v545_v15 = vpop.permute.xlu1 %544  ;;  %v584_v50 = vadd.f32 %v583_v48, %v569_v46 }
 0x1f5   :  { %v458_v31 = vpop.trf.xlu0 }
 0x1f6   :  { %v570_v49 = vmul.f32 %v525_v37, %v458_v31 }
 0x1f8   :  { %v585_v53 = vadd.f32 %v584_v50, %v570_v49  ;;  %v555_v63 = vpop.permute.xlu1 %554 }
 0x1fd   :  { %v459_v33 = vpop.trf.xlu0 }
 0x1fe   :  { %v571_v51 = vmul.f32 %v530_v39, %v459_v33 }
 0x200   :  { %v586_v56 = vadd.f32 %v585_v53, %v571_v51  ;;  %v603_v52 = vpop.permute.xlu1 %602 }
 0x201   :  { %v605_v14 = vperm.slane %v603_v52, 0 }
 0x205   :  { %v460_v36 = vpop.trf.xlu0 }
 0x206   :  { %v572_v54 = vmul.f32 %v535_v40, %v460_v36 }
 0x208   :  { %v587_v59 = vadd.f32 %v586_v56, %v572_v54 }
 0x20d   :  { %v461_v38 = vpop.trf.xlu0 }
 0x20e   :  { %v573_v57 = vmul.f32 %v540_v43, %v461_v38 }
 0x210   :  { %v588_v61 = vadd.f32 %v587_v59, %v573_v57 }
 0x215   :  { %v462_v41 = vpop.trf.xlu0 }
 0x216   :  { %v574_v60 = vmul.f32 %v545_v15, %v462_v41 }
 0x218   :  { %v589_v0 = vadd.f32 %v588_v61, %v574_v60 }
 0x21d   :  { %v463_v47 = vpop.trf.xlu0 }
 0x21e   :  { %v575_v62 = vmul.f32 %v550_v55, %v463_v47 }
 0x220   :  { %v590_v2 = vadd.f32 %v589_v0, %v575_v62 }
 0x225   :  { %v464_v58 = vpop.trf.xlu0 }
 0x226   :  { %v576_v1 = vmul.f32 %v555_v63, %v464_v58 }
 0x228   :  { %v591_v6 = vadd.f32 %v590_v2, %v576_v1 }
 0x22d   :  { %v465_v4 = vpop.trf.xlu0 }
 0x22e   :  { %v577_v7 = vmul.f32 %v560_v3, %v465_v4 }
 0x230   :  { %v592_v8 = vadd.f32 %v591_v6, %v577_v7 }
 0x232   :  { %v593_v9 = vrot.slane %v592_v8, 4 }
 0x234   :  { %v594_v10 = vadd.f32 %v593_v9, %v592_v8 }
 0x236   :  { %v595_v11 = vrot.slane %v594_v10, 2 }
 0x238   :  { %v596_v12 = vadd.f32 %v595_v11, %v594_v10 }
 0x23a   :  { %v597_v13 = vrot.slane %v596_v12, 1 }
 0x23c   :  { %v598_v16 = vadd.f32 %v597_v13, %v596_v12 }
 0x23e   :  { %v606_v17 = vadd.f32 %v605_v14, %v598_v16 }
 0x240   :  { %607 = vst [vmem:[%s1010_s9] sm:$0x1] %v606_v17 }

</bundles_post_ra>
